<compile_context>
chip_gen: v6e
topology: v6e:2x2x1
jax: 0.10.0
libtpu: 0.0.40
codegen_flags: <defaults>
</compile_context>

<pallas_src>
import numpy as np
import jax
import jax.numpy as jnp
from jax.experimental import pallas as pl
from jax.experimental.pallas import tpu as pltpu

LANE = 128
SUBLANE = 8
MAX_TILE_M = 256     # rows per grid block (MXU height on v6e/v7x)


def _round_up(x, m):
    return (x + m - 1) // m * m


# ---------------------------------------------------------------------------
# Fused Pallas kernel: 3 x (GEMM + bias + PReLU) + residual adds, VMEM-resident.
# All operands / intermediates are f32 and lane-dense (widths multiple of 128).
# ---------------------------------------------------------------------------
def _upblock_kernel(alpha_ref,            # SMEM (3,)  f32  PReLU slopes
                    x_ref,                # (TM, Kx)         f32 (Kx = pad(C*Lin))
                    g1_ref, b1_ref,       # (Kx, N1), (1, N1)
                    g2_ref, b2_ref,       # (N1, Kx), (1, Kx)
                    g3_ref, b3_ref,       # (Kx, N3), (1, N3)
                    o_ref):               # (TM, N3)
    x = x_ref[...]

    # stage 1: transposed conv (banded GEMM) + bias + PReLU -> h0
    h0 = jnp.dot(x, g1_ref[...], preferred_element_type=jnp.float32) + b1_ref[...]
    h0 = jnp.where(h0 >= 0.0, h0, alpha_ref[0] * h0)

    # stage 2: strided conv (banded GEMM) + bias + PReLU -> l0
    l0 = jnp.dot(h0, g2_ref[...], preferred_element_type=jnp.float32) + b2_ref[...]
    l0 = jnp.where(l0 >= 0.0, l0, alpha_ref[1] * l0)

    # stage 3: transposed conv on the residual (l0 - x) + bias + PReLU -> h1
    h1 = jnp.dot(l0 - x, g3_ref[...], preferred_element_type=jnp.float32) + b3_ref[...]
    h1 = jnp.where(h1 >= 0.0, h1, alpha_ref[2] * h1)

    o_ref[...] = (h1 + h0).astype(o_ref.dtype)


# ---------------------------------------------------------------------------
# Banded weight matrices (built ONCE in prepare_params; fold taps/stride/pad).
# Activation flattening is channel-major (NCL order): flat index = c*L + l.
# ---------------------------------------------------------------------------
def _deconv_band_matrix(wt, Lin, Lout, stride, padding):
    """ConvTranspose1d weight (Cin, Cout, K) -> (Cin*Lin, Cout*Lout) banded matrix.
    G[ci*Lin + t, co*Lout + l] = wt[ci, co, l + padding - t*stride] (0 if OOR)."""
    Cin, Cout, K = wt.shape
    t = jnp.arange(Lin)[:, None]
    l = jnp.arange(Lout)[None, :]
    k = l + padding - t * stride                      # (Lin, Lout)
    valid = (k >= 0) & (k < K)
    w_k = jnp.transpose(wt, (2, 0, 1))                # (K, Cin, Cout)
    block = w_k[jnp.clip(k, 0, K - 1)]                # (Lin, Lout, Cin, Cout)
    block = jnp.where(valid[:, :, None, None], block, 0.0)
    return jnp.transpose(block, (2, 0, 3, 1)).reshape(Cin * Lin, Cout * Lout)


def _conv_band_matrix(w, Lin, Lout, stride, padding):
    """Conv1d weight (Cout, Cin, K) -> (Cin*Lin, Cout*Lout) banded matrix.
    G[ci*Lin + t, co*Lout + l] = w[co, ci, t - l*stride + padding] (0 if OOR)."""
    Cout, Cin, K = w.shape
    t = jnp.arange(Lin)[:, None]
    l = jnp.arange(Lout)[None, :]
    k = t - l * stride + padding                      # (Lin, Lout)
    valid = (k >= 0) & (k < K)
    w_k = jnp.transpose(w, (2, 1, 0))                 # (K, Cin, Cout)
    block = w_k[jnp.clip(k, 0, K - 1)]                # (Lin, Lout, Cin, Cout)
    block = jnp.where(valid[:, :, None, None], block, 0.0)
    return jnp.transpose(block, (2, 0, 3, 1)).reshape(Cin * Lin, Cout * Lout)


# ---------------------------------------------------------------------------
# Parameter preparation: done ONCE (hoisted out of the per-call forward).
# Builds the lane-padded banded matrices, repeated biases and PReLU slopes.
# ---------------------------------------------------------------------------
def prepare_params(params, channels, length, kernel_size=8, stride=4, padding=2):
    C, Lin, K, S, P = channels, length, kernel_size, stride, padding
    L1 = (Lin - 1) * S - 2 * P + K          # deconv1 output length
    L2 = (L1 + 2 * P - K) // S + 1          # conv2 output length
    L3 = (L2 - 1) * S - 2 * P + K           # deconv3 / final output length
    assert L2 == Lin, "UpBlock requires conv2 to restore the input length"

    g1 = _deconv_band_matrix(params['up1_w'].astype(jnp.float32), Lin, L1, S, P)
    g2 = _conv_band_matrix(params['up2_w'].astype(jnp.float32), L1, L2, S, P)
    g3 = _deconv_band_matrix(params['up3_w'].astype(jnp.float32), L2, L3, S, P)

    # Lane padding: C*Lin and C*L2 (== C*Lin) are 64-wide -> pad to 128 so x,
    # l0 and the residual are full-lane; padded rows/cols of G and biases are 0.
    Kx = _round_up(C * Lin, LANE)
    N1 = _round_up(C * L1, LANE)
    N3 = _round_up(C * L3, LANE)

    g1p = jnp.zeros((Kx, N1), jnp.float32).at[:C * Lin, :C * L1].set(g1)
    g2p = jnp.zeros((N1, Kx), jnp.float32).at[:C * L1, :C * L2].set(g2)
    g3p = jnp.zeros((Kx, N3), jnp.float32).at[:C * L2, :C * L3].set(g3)

    b1 = jnp.zeros((1, N1), jnp.float32).at[:, :C * L1].set(
        jnp.repeat(params['up1_b'].astype(jnp.float32), L1))
    b2 = jnp.zeros((1, Kx), jnp.float32).at[:, :C * L2].set(
        jnp.repeat(params['up2_b'].astype(jnp.float32), L2))
    b3 = jnp.zeros((1, N3), jnp.float32).at[:, :C * L3].set(
        jnp.repeat(params['up3_b'].astype(jnp.float32), L3))

    alphas = jnp.stack([params['up1_a'], params['up2_a'],
                        params['up3_a']]).astype(jnp.float32)

    prepared = dict(g1=g1p, b1=b1, g2=g2p, b2=b2, g3=g3p, b3=b3, alphas=alphas)
    dims = dict(C=C, Lin=Lin, L3=L3, Kx=Kx, N1=N1, N3=N3, CL3=C * L3)
    return prepared, dims


# ---------------------------------------------------------------------------
# UpBlock forward (jit the closure over prepared/dims; weight prep not redone).
# ---------------------------------------------------------------------------
def upblock_forward(x_ncl, prepared, dims):
    C, Lin, L3 = dims['C'], dims['Lin'], dims['L3']
    Kx, N1, N3, CL3 = dims['Kx'], dims['N1'], dims['N3'], dims['CL3']
    N = x_ncl.shape[0]

    # Flatten NCL, pad rows to a full sublane/MXU tile and cols to 128 lanes.
    tile_m = min(_round_up(N, SUBLANE), MAX_TILE_M)
    Np = _round_up(N, tile_m)
    x_flat = x_ncl.reshape(N, C * Lin).astype(jnp.float32)
    x_pad = jnp.zeros((Np, Kx), jnp.float32).at[:N, :C * Lin].set(x_flat)

    grid = (Np // tile_m,)

    out_pad = pl.pallas_call(
        _upblock_kernel,
        out_shape=jax.ShapeDtypeStruct((Np, N3), jnp.float32),
        grid=grid,
        in_specs=[
            pl.BlockSpec(memory_space=pltpu.MemorySpace.SMEM),   # PReLU slopes
            pl.BlockSpec((tile_m, Kx), lambda i: (i, 0)),        # x rows
            pl.BlockSpec((Kx, N1), lambda i: (0, 0)),            # g1
            pl.BlockSpec((1, N1), lambda i: (0, 0)),             # b1
            pl.BlockSpec((N1, Kx), lambda i: (0, 0)),            # g2
            pl.BlockSpec((1, Kx), lambda i: (0, 0)),             # b2
            pl.BlockSpec((Kx, N3), lambda i: (0, 0)),            # g3
            pl.BlockSpec((1, N3), lambda i: (0, 0)),             # b3
        ],
        out_specs=pl.BlockSpec((tile_m, N3), lambda i: (i, 0)),
        compiler_params=pltpu.CompilerParams(
            dimension_semantics=("parallel",)),                  # shard batch tiles across TCs (v7x)
    )(prepared['alphas'], x_pad, prepared['g1'], prepared['b1'],
      prepared['g2'], prepared['b2'], prepared['g3'], prepared['b3'])

    return out_pad[:N, :CL3].reshape(N, C, L3)


def init_params(key, channels, kernel_size=8):
    ks = jax.random.split(key, 6)
    w = lambda k, shape: 0.1 * jax.random.normal(k, shape, jnp.float32)
    return {
        'up1_w': w(ks[0], (channels, channels, kernel_size)),   # ConvTranspose1d (I, O, K)
        'up1_b': w(ks[1], (channels,)),
        'up1_a': jnp.float32(0.25),                             # nn.PReLU() default slope
        'up2_w': w(ks[2], (channels, channels, kernel_size)),   # Conv1d (O, I, K)
        'up2_b': w(ks[3], (channels,)),
        'up2_a': jnp.float32(0.25),
        'up3_w': w(ks[4], (channels, channels, kernel_size)),   # ConvTranspose1d (I, O, K)
        'up3_b': w(ks[5], (channels,)),
        'up3_a': jnp.float32(0.25),
    }


# ---------------------------------------------------------------------------
# Pure-numpy loop reference (matches PyTorch Conv1d / ConvTranspose1d exactly)
# ---------------------------------------------------------------------------
def _np_prelu(x, a):
    return np.where(x >= 0, x, a * x)


def _np_conv1d(x, w, b, stride, padding):
    N, Cin, L = x.shape
    Cout, _, K = w.shape
    xp = np.pad(x, ((0, 0), (0, 0), (padding, padding)))
    Lout = (L + 2 * padding - K) // stride + 1
    out = np.zeros((N, Cout, Lout), np.float32)
    for n in range(N):
        for co in range(Cout):
            for l in range(Lout):
                out[n, co, l] = b[co] + np.sum(xp[n, :, l * stride:l * stride + K] * w[co])
    return out


def _np_deconv1d(x, w, b, stride, padding):
    N, Cin, L = x.shape
    _, Cout, K = w.shape
    Lout = (L - 1) * stride - 2 * padding + K
    out = np.zeros((N, Cout, Lout), np.float32)
    out += b[None, :, None]
    for n in range(N):
        for co in range(Cout):
            for ci in range(Cin):
                for i in range(L):
                    for k in range(K):
                        l = i * stride - padding + k
                        if 0 <= l < Lout:
                            out[n, co, l] += x[n, ci, i] * w[ci, co, k]
    return out


def _np_forward(x, p, stride=4, padding=2):
    h0 = _np_prelu(_np_deconv1d(x, p['up1_w'], p['up1_b'], stride, padding), p['up1_a'])
    l0 = _np_prelu(_np_conv1d(h0, p['up2_w'], p['up2_b'], stride, padding), p['up2_a'])
    h1 = _np_prelu(_np_deconv1d(l0 - x, p['up3_w'], p['up3_b'], stride, padding), p['up3_a'])
    return h1 + h0


if __name__ == "__main__":
    key = jax.random.PRNGKey(0)
    kx, kp = jax.random.split(key)

    channels, L = 4, 16
    x = jax.random.normal(kx, (2, channels, L), jnp.float32)
    params = init_params(kp, channels, kernel_size=8)

    # One-time parameter preparation (banded matrices, padded biases, slopes).
    prepared, dims = prepare_params(params, channels, L, kernel_size=8, stride=4, padding=2)

    fwd = jax.jit(lambda xx: upblock_forward(xx, prepared, dims))
    out = jax.block_until_ready(fwd(x))

    # verify against the loop reference (f32 GEMM operands + f32 accumulation)
    p_np = {k: np.asarray(v, np.float32) for k, v in params.items()}
    ref = _np_forward(np.asarray(x, np.float32), p_np)
    assert out.shape == ref.shape, (out.shape, ref.shape)
    err = float(np.max(np.abs(np.asarray(out) - ref)))
    assert np.allclose(np.asarray(out), ref, atol=1e-2, rtol=1e-2), err

    print("KERNEL_OK")
</pallas_src>

<mosaic_0001>
module attributes {stable_mosaic.version = 11 : i64} {
  func.func @_upblock_kernel(%arg0: i32, %arg1: memref<3xf32, #tpu.memory_space<smem>>, %arg2: memref<8x128xf32, #tpu.memory_space<vmem>>, %arg3: memref<128x256xf32, #tpu.memory_space<vmem>>, %arg4: memref<1x256xf32, #tpu.memory_space<vmem>>, %arg5: memref<256x128xf32, #tpu.memory_space<vmem>>, %arg6: memref<1x128xf32, #tpu.memory_space<vmem>>, %arg7: memref<128x256xf32, #tpu.memory_space<vmem>>, %arg8: memref<1x256xf32, #tpu.memory_space<vmem>>, %arg9: memref<8x256xf32, #tpu.memory_space<vmem>>) attributes {dimension_semantics = [#tpu.dimension_semantics<parallel>], iteration_bounds = array<i64: 1>, scalar_prefetch = 0 : i64, scratch_operands = 0 : i64, tpu.core_type = #tpu.core_type<tc>, window_params = [{transform_indices = @transform_0, window_bounds = array<i64: 3>}, {transform_indices = @transform_1, window_bounds = array<i64: 8, 128>}, {pipeline_mode = #tpu.pipeline_mode<synchronous>, transform_indices = @transform_2, window_bounds = array<i64: 128, 256>}, {pipeline_mode = #tpu.pipeline_mode<synchronous>, transform_indices = @transform_3, window_bounds = array<i64: 1, 256>}, {pipeline_mode = #tpu.pipeline_mode<synchronous>, transform_indices = @transform_4, window_bounds = array<i64: 256, 128>}, {pipeline_mode = #tpu.pipeline_mode<synchronous>, transform_indices = @transform_5, window_bounds = array<i64: 1, 128>}, {pipeline_mode = #tpu.pipeline_mode<synchronous>, transform_indices = @transform_6, window_bounds = array<i64: 128, 256>}, {pipeline_mode = #tpu.pipeline_mode<synchronous>, transform_indices = @transform_7, window_bounds = array<i64: 1, 256>}, {transform_indices = @transform_8, window_bounds = array<i64: 8, 256>}]} {
    %c0 = arith.constant 0 : index
    %c0_0 = arith.constant 0 : index
    %0 = vector.load %arg2[%c0, %c0_0] : memref<8x128xf32, #tpu.memory_space<vmem>>, vector<8x128xf32>
    %c0_1 = arith.constant 0 : index
    %c0_2 = arith.constant 0 : index
    %1 = vector.load %arg3[%c0_1, %c0_2] : memref<128x256xf32, #tpu.memory_space<vmem>>, vector<128x256xf32>
    %cst = arith.constant dense<0.000000e+00> : vector<8x256xf32>
    %2 = tpu.matmul %0, %1, %cst {dimension_numbers = #tpu.dot_dimension_numbers<[1], [0], [0], [1], [0, 0, 1, 1], [], []>} : vector<8x128xf32>, vector<128x256xf32>, vector<8x256xf32> -> vector<8x256xf32>
    %c0_3 = arith.constant 0 : index
    %c0_4 = arith.constant 0 : index
    %3 = vector.load %arg4[%c0_3, %c0_4] : memref<1x256xf32, #tpu.memory_space<vmem>>, vector<1x256xf32>
    %4 = vector.broadcast %3 : vector<1x256xf32> to vector<8x256xf32>
    %5 = arith.addf %2, %4 : vector<8x256xf32>
    %cst_5 = arith.constant 0.000000e+00 : f32
    %6 = vector.broadcast %cst_5 : f32 to vector<8x256xf32>
    %7 = arith.cmpf oge, %5, %6 : vector<8x256xf32>
    %c0_6 = arith.constant 0 : index
    %8 = memref.load %arg1[%c0_6] : memref<3xf32, #tpu.memory_space<smem>>
    %9 = vector.broadcast %8 : f32 to vector<8x256xf32>
    %10 = arith.mulf %9, %5 : vector<8x256xf32>
    %11 = arith.select %7, %5, %10 : vector<8x256xi1>, vector<8x256xf32>
    %c0_7 = arith.constant 0 : index
    %c0_8 = arith.constant 0 : index
    %12 = vector.load %arg5[%c0_7, %c0_8] : memref<256x128xf32, #tpu.memory_space<vmem>>, vector<256x128xf32>
    %cst_9 = arith.constant dense<0.000000e+00> : vector<8x128xf32>
    %13 = tpu.matmul %11, %12, %cst_9 {dimension_numbers = #tpu.dot_dimension_numbers<[1], [0], [0], [1], [0, 0, 1, 1], [], []>} : vector<8x256xf32>, vector<256x128xf32>, vector<8x128xf32> -> vector<8x128xf32>
    %c0_10 = arith.constant 0 : index
    %c0_11 = arith.constant 0 : index
    %14 = vector.load %arg6[%c0_10, %c0_11] : memref<1x128xf32, #tpu.memory_space<vmem>>, vector<1x128xf32>
    %15 = vector.broadcast %14 : vector<1x128xf32> to vector<8x128xf32>
    %16 = arith.addf %13, %15 : vector<8x128xf32>
    %cst_12 = arith.constant 0.000000e+00 : f32
    %17 = vector.broadcast %cst_12 : f32 to vector<8x128xf32>
    %18 = arith.cmpf oge, %16, %17 : vector<8x128xf32>
    %c1 = arith.constant 1 : index
    %19 = memref.load %arg1[%c1] : memref<3xf32, #tpu.memory_space<smem>>
    %20 = vector.broadcast %19 : f32 to vector<8x128xf32>
    %21 = arith.mulf %20, %16 : vector<8x128xf32>
    %22 = arith.select %18, %16, %21 : vector<8x128xi1>, vector<8x128xf32>
    %23 = arith.subf %22, %0 : vector<8x128xf32>
    %c0_13 = arith.constant 0 : index
    %c0_14 = arith.constant 0 : index
    %24 = vector.load %arg7[%c0_13, %c0_14] : memref<128x256xf32, #tpu.memory_space<vmem>>, vector<128x256xf32>
    %cst_15 = arith.constant dense<0.000000e+00> : vector<8x256xf32>
    %25 = tpu.matmul %23, %24, %cst_15 {dimension_numbers = #tpu.dot_dimension_numbers<[1], [0], [0], [1], [0, 0, 1, 1], [], []>} : vector<8x128xf32>, vector<128x256xf32>, vector<8x256xf32> -> vector<8x256xf32>
    %c0_16 = arith.constant 0 : index
    %c0_17 = arith.constant 0 : index
    %26 = vector.load %arg8[%c0_16, %c0_17] : memref<1x256xf32, #tpu.memory_space<vmem>>, vector<1x256xf32>
    %27 = vector.broadcast %26 : vector<1x256xf32> to vector<8x256xf32>
    %28 = arith.addf %25, %27 : vector<8x256xf32>
    %cst_18 = arith.constant 0.000000e+00 : f32
    %29 = vector.broadcast %cst_18 : f32 to vector<8x256xf32>
    %30 = arith.cmpf oge, %28, %29 : vector<8x256xf32>
    %c2 = arith.constant 2 : index
    %31 = memref.load %arg1[%c2] : memref<3xf32, #tpu.memory_space<smem>>
    %32 = vector.broadcast %31 : f32 to vector<8x256xf32>
    %33 = arith.mulf %32, %28 : vector<8x256xf32>
    %34 = arith.select %30, %28, %33 : vector<8x256xi1>, vector<8x256xf32>
    %35 = arith.addf %34, %11 : vector<8x256xf32>
    %c0_19 = arith.constant 0 : index
    %c0_20 = arith.constant 0 : index
    %36 = vector.load %arg9[%c0_19, %c0_20] : memref<8x256xf32, #tpu.memory_space<vmem>>, vector<8x256xf32>
    tpu.vector_store %arg9[%c0_19, %c0_20], %35 {strides = array<i32>} : memref<8x256xf32, #tpu.memory_space<vmem>>, vector<8x256xf32>,
    return
  }
  func.func @transform_0(%arg0: i32) -> i32 {
    %c0_i32 = arith.constant 0 : i32
    %c0_i32_0 = arith.constant 0 : i32
    return %c0_i32 : i32
  }
  func.func @transform_1(%arg0: i32) -> (i32, i32) {
    %c0_i32 = arith.constant 0 : i32
    %c0_i32_0 = arith.constant 0 : i32
    return %arg0, %c0_i32 : i32, i32
  }
  func.func @transform_2(%arg0: i32) -> (i32, i32) {
    %c0_i32 = arith.constant 0 : i32
    %c0_i32_0 = arith.constant 0 : i32
    %c0_i32_1 = arith.constant 0 : i32
    return %c0_i32, %c0_i32_0 : i32, i32
  }
  func.func @transform_3(%arg0: i32) -> (i32, i32) {
    %c0_i32 = arith.constant 0 : i32
    %c0_i32_0 = arith.constant 0 : i32
    %c0_i32_1 = arith.constant 0 : i32
    return %c0_i32, %c0_i32_0 : i32, i32
  }
  func.func @transform_4(%arg0: i32) -> (i32, i32) {
    %c0_i32 = arith.constant 0 : i32
    %c0_i32_0 = arith.constant 0 : i32
    %c0_i32_1 = arith.constant 0 : i32
    return %c0_i32, %c0_i32_0 : i32, i32
  }
  func.func @transform_5(%arg0: i32) -> (i32, i32) {
    %c0_i32 = arith.constant 0 : i32
    %c0_i32_0 = arith.constant 0 : i32
    %c0_i32_1 = arith.constant 0 : i32
    return %c0_i32, %c0_i32_0 : i32, i32
  }
  func.func @transform_6(%arg0: i32) -> (i32, i32) {
    %c0_i32 = arith.constant 0 : i32
    %c0_i32_0 = arith.constant 0 : i32
    %c0_i32_1 = arith.constant 0 : i32
    return %c0_i32, %c0_i32_0 : i32, i32
  }
  func.func @transform_7(%arg0: i32) -> (i32, i32) {
    %c0_i32 = arith.constant 0 : i32
    %c0_i32_0 = arith.constant 0 : i32
    %c0_i32_1 = arith.constant 0 : i32
    return %c0_i32, %c0_i32_0 : i32, i32
  }
  func.func @transform_8(%arg0: i32) -> (i32, i32) {
    %c0_i32 = arith.constant 0 : i32
    %c0_i32_0 = arith.constant 0 : i32
    return %arg0, %c0_i32 : i32, i32
  }
}

</mosaic_0001>

<bundles_post_ra>
// kernel: _lambda_.1
= control target key start
LH: loop header
LB: loop body
LE: loop exit
PB: predicated region body
PF: predicated region fallthrough
CT: control target
= control target key end

     0   :  { %13 = vsyncpa [#allocation4], 0  ;;  %s671_s0 = inlined_call_operand.vmem [shape: f32[3], index: 0, kind: input, shape index: {}]   ;;  %s672_s1 = inlined_call_operand.vmem [shape: f32[8,128], index: 1, kind: input, shape index: {}]   ;;  %s673_s2 = inlined_call_operand.hbm [shape: f32[128,256], index: 2, kind: input, shape index: {}]   ;;  %s674_s3 = inlined_call_operand.vmem [shape: f32[1,256], index: 3, kind: input, shape index: {}]   ;;  %s675_s4 = inlined_call_operand.hbm [shape: f32[256,128], index: 4, kind: input, shape index: {}]   ;;  %s676_s5 = inlined_call_operand.vmem [shape: f32[1,128], index: 5, kind: input, shape index: {}]   ;;  %s677_s6 = inlined_call_operand.hbm [shape: f32[128,256], index: 6, kind: input, shape index: {}]   ;;  %s678_s7 = inlined_call_operand.vmem [shape: f32[1,256], index: 7, kind: input, shape index: {}]   ;;  %s679_s8 = inlined_call_operand.vmem [shape: f32[8,256], index: 8, kind: output, shape index: {}]  }
   0x1   :  { %14 = vsyncpa [#allocation3], 0 }
   0x2   :  { %15 = vsyncpa [#allocation7], 0  ;;  %s581_s27 = smov [#allocation6]   ;;  %s22_s9 = sshll.u32 %s671_s0, 4  ;;  %s23_s9 = int_to_ptr.vmem [resolvable:$true] %s22_s9 }
   0x3   :  { %s47_s28 = sshll.u32 %s581_s27, 4  ;;  %s48_s28 = int_to_ptr.vmem [resolvable:$true] %s47_s28 }
   0x4   :  { %s511_s10 = scalar_lea.vmem %s48_s28, 4096  ;;  %p516_p1 = scmp.lt.s32.totalorder %s48_s28, %s48_s28 }
   0x5   :  { %p512_p0 = scmp.ne.s32.totalorder %s48_s28, %s511_s10  ;;  %p517_p2 = scmp.lt.s32.totalorder %s511_s10, %s511_s10 }
   0x7   :  { %p518_p3 = por %p517_p2, %p516_p1 }
   0x9   :  { %p519_p4 = pnand %p518_p3, %p512_p0 }
   0xb   :  { %522 = shalt.err (!%p519_p4)
}
   0xc   :  { %s582_s11 = smov 128   ;;  %s583_s12 = smov 8  }
   0xd   :  { %53 = dma.hbm_to_vmem [thread:$0]  %s675_s4, 4096, %s48_s28, [#allocation7], %s582_s11, %s582_s11, %s583_s12  }
   0xe   :  { %s523_s15 = scalar_lea.vmem %s23_s9, 16  ;;  %p528_p6 = scmp.lt.s32.totalorder %s23_s9, %s23_s9 }
   0xf   :  { %p524_p5 = scmp.ne.s32.totalorder %s23_s9, %s523_s15  ;;  %p529_p7 = scmp.lt.s32.totalorder %s523_s15, %s523_s15 }
  0x11   :  { %p530_p8 = por %p529_p7, %p528_p6 }
  0x13   :  { %p531_p9 = pnand %p530_p8, %p524_p5 }
  0x15   :  { %534 = shalt.err (!%p531_p9)
}
  0x16   :  { %s584_s0 = smov [#allocation2]   ;;  %s585_s16 = smov [#allocation5]  }
  0x17   :  { %25 = dma.vmem_to_smem %s23_s9, 16, %s584_s0, [#allocation4]  }
  0x18   :  { %s33_s17 = sshll.u32 %s585_s16, 4  ;;  %s34_s17 = int_to_ptr.vmem [resolvable:$true] %s33_s17 }
  0x19   :  { %s543_s18 = scalar_lea.vmem %s34_s17, 4096  ;;  %p548_p11 = scmp.lt.s32.totalorder %s34_s17, %s34_s17 }
  0x1a   :  { %p544_p10 = scmp.ne.s32.totalorder %s34_s17, %s543_s18  ;;  %p549_p12 = scmp.lt.s32.totalorder %s543_s18, %s543_s18 }
  0x1c   :  { %p550_p13 = por %p549_p12, %p548_p11 }
  0x1e   :  { %p551_p0 = pnand %p550_p13, %p544_p10 }
  0x20   :  { %554 = shalt.err (!%p551_p0)
}
  0x21   :  { %s586_s4 = smov 256   ;;  %s587_s19 = smov 16  }
  0x22   :  { %39 = dma.hbm_to_vmem [thread:$0]  %s673_s2, 4096, %s34_s17, [#allocation3], %s586_s4, %s586_s4, %s587_s19  }
  0x23   :  { %s588_s22 = smov [#allocation8]  }
  0x24   :  { %s61_s23 = sshll.u32 %s588_s22, 4  ;;  %s62_s23 = int_to_ptr.vmem [resolvable:$true] %s61_s23 }
  0x25   :  { %s563_s24 = scalar_lea.vmem %s62_s23, 4096  ;;  %p568_p2 = scmp.lt.s32.totalorder %s62_s23, %s62_s23 }
  0x26   :  { %p564_p1 = scmp.ne.s32.totalorder %s62_s23, %s563_s24  ;;  %p569_p3 = scmp.lt.s32.totalorder %s563_s24, %s563_s24 }
  0x28   :  { %p570_p4 = por %p569_p3, %p568_p2 }
  0x2a   :  { %p571_p5 = pnand %p570_p4, %p564_p1 }
  0x2c   :  { %574 = shalt.err (!%p571_p5)
}
  0x2d   :  { %67 = dma.hbm_to_vmem [thread:$0]  %s677_s6, 4096, %s62_s23, [#allocation7], %s586_s4, %s586_s4, %s587_s19  }
  0x2e   :  { %575 = dma.done.wait [#allocation4], 16  }
  0x2f   :  { %576 = vsyncadd [#allocation4], 4294967280 }
  0x30   :  { %577 = dma.done.wait [#allocation3], 4096  }
  0x31   :  { %578 = vsyncadd [#allocation3], 4294963200 }
  0x32   :  { %579 = dma.done.wait [#allocation7], 8192  }
  0x33   :  { %580 = vsyncadd [#allocation7], 4294959104 }
  0x34   :  { %82 = sfence }
  0x35   :  { %v115_v0 = vld [vmem:[#allocation5 + $0xf8] sm:$0xff]  ;;  %v114_v1 = vld [vmem:[#allocation5 + $0xf0] sm:$0xff]  ;;  %v113_v2 = vld [vmem:[#allocation5 + $0xe8] sm:$0xff]  ;;  %v589_v4 = vmov 0.0   ;;  %s458_s9 = sld [smem:[#allocation2 + $0x2]] }
  0x36   :  { %128 = vmatprep.subr.mxu0 %v115_v0  ;;  %v112_v3 = vld [vmem:[#allocation5 + $0xe0] sm:$0xff]  ;;  %192 = vmatprep.mubr.f32.mxu0 %v589_v4  ;;  %v111_v5 = vld [vmem:[#allocation5 + $0xd8] sm:$0xff]  ;;  %v110_v6 = vld [vmem:[#allocation5 + $0xd0] sm:$0xff] }
  0x37   :  { %129 = vmatpush1.msra.mxu0 %v114_v1  ;;  %v109_v7 = vld [vmem:[#allocation5 + $0xc8] sm:$0xff]  ;;  %v108_v8 = vld [vmem:[#allocation5 + $0xc0] sm:$0xff]  ;;  %v107_v9 = vld [vmem:[#allocation5 + $0xb8] sm:$0xff] }
  0x38   :  { %130 = vmatprep.subr.mxu0 %v113_v2  ;;  %v106_v10 = vld [vmem:[#allocation5 + $0xb0] sm:$0xff]  ;;  %v105_v11 = vld [vmem:[#allocation5 + $0xa8] sm:$0xff]  ;;  %v104_v12 = vld [vmem:[#allocation5 + $0xa0] sm:$0xff] }
  0x39   :  { %131 = vmatpush1.msra.mxu0 %v112_v3  ;;  %v103_v13 = vld [vmem:[#allocation5 + $0x98] sm:$0xff]  ;;  %v102_v14 = vld [vmem:[#allocation5 + $0x90] sm:$0xff]  ;;  %v101_v18 = vld [vmem:[#allocation5 + $0x88] sm:$0xff] }
  0x3a   :  { %132 = vmatprep.subr.mxu0 %v111_v5  ;;  %v238_v15 = vld [vmem:[#allocation6 + $0xf8] sm:$0xff]  ;;  %v237_v17 = vld [vmem:[#allocation6 + $0xf0] sm:$0xff]  ;;  %v100_v20 = vld [vmem:[#allocation5 + $0x80] sm:$0xff] }
  0x3b   :  { %133 = vmatpush1.msra.mxu0 %v110_v6  ;;  %v222_v16 = vld [vmem:[#allocation6 + $0x78] sm:$0xff]  ;;  %459 = vmatprep.subr.mxu1 %v238_v15  ;;  %v221_v19 = vld [vmem:[#allocation6 + $0x70] sm:$0xff]  ;;  %v236_v21 = vld [vmem:[#allocation6 + $0xe8] sm:$0xff] }
  0x3c   :  { %134 = vmatprep.subr.mxu0 %v109_v7  ;;  %460 = vmatpush3.msra.mxu1 %v222_v16  ;;  %v99_v22 = vld [vmem:[#allocation5 + $0x78] sm:$0xff]  ;;  %v220_v23 = vld [vmem:[#allocation6 + $0x68] sm:$0xff]  ;;  %v98_v24 = vld [vmem:[#allocation5 + $0x70] sm:$0xff] }
  0x3d   :  { %135 = vmatpush1.msra.mxu0 %v108_v8  ;;  %461 = vmatprep.subr.mxu1 %v237_v17  ;;  %v235_v25 = vld [vmem:[#allocation6 + $0xe0] sm:$0xff]  ;;  %v97_v26 = vld [vmem:[#allocation5 + $0x68] sm:$0xff]  ;;  %v234_v29 = vld [vmem:[#allocation6 + $0xd8] sm:$0xff] }
  0x3e   :  { %136 = vmatprep.subr.mxu0 %v107_v9  ;;  %462 = vmatpush3.msra.mxu1 %v221_v19  ;;  %v219_v27 = vld [vmem:[#allocation6 + $0x60] sm:$0xff]  ;;  %v95_v30 = vld [vmem:[#allocation5 + $0x58] sm:$0xff]  ;;  %v94_v32 = vld [vmem:[#allocation5 + $0x50] sm:$0xff] }
  0x3f   :  { %137 = vmatpush1.msra.mxu0 %v106_v10  ;;  %463 = vmatprep.subr.mxu1 %v236_v21  ;;  %v96_v28 = vld [vmem:[#allocation5 + $0x60] sm:$0xff]  ;;  %v218_v31 = vld [vmem:[#allocation6 + $0x58] sm:$0xff]  ;;  %v233_v33 = vld [vmem:[#allocation6 + $0xd0] sm:$0xff] }
  0x40   :  { %138 = vmatprep.subr.mxu0 %v105_v11  ;;  %464 = vmatpush3.msra.mxu1 %v220_v23  ;;  %v93_v34 = vld [vmem:[#allocation5 + $0x48] sm:$0xff]  ;;  %v217_v35 = vld [vmem:[#allocation6 + $0x50] sm:$0xff]  ;;  %v92_v36 = vld [vmem:[#allocation5 + $0x40] sm:$0xff] }
  0x41   :  { %139 = vmatpush1.msra.mxu0 %v104_v12  ;;  %465 = vmatprep.subr.mxu1 %v235_v25  ;;  %v232_v37 = vld [vmem:[#allocation6 + $0xc8] sm:$0xff]  ;;  %v91_v38 = vld [vmem:[#allocation5 + $0x38] sm:$0xff]  ;;  %v90_v40 = vld [vmem:[#allocation5 + $0x30] sm:$0xff] }
  0x42   :  { %140 = vmatprep.subr.mxu0 %v103_v13  ;;  %466 = vmatpush3.msra.mxu1 %v219_v27  ;;  %v216_v39 = vld [vmem:[#allocation6 + $0x48] sm:$0xff]  ;;  %v231_v41 = vld [vmem:[#allocation6 + $0xc0] sm:$0xff]  ;;  %v230_v45 = vld [vmem:[#allocation6 + $0xb8] sm:$0xff] }
  0x43   :  { %141 = vmatpush1.msra.mxu0 %v102_v14  ;;  %467 = vmatprep.subr.mxu1 %v234_v29  ;;  %v89_v42 = vld [vmem:[#allocation5 + $0x28] sm:$0xff]  ;;  %v215_v43 = vld [vmem:[#allocation6 + $0x40] sm:$0xff]  ;;  %v87_v46 = vld [vmem:[#allocation5 + $0x18] sm:$0xff] }
  0x44   :  { %142 = vmatprep.subr.mxu0 %v101_v18  ;;  %468 = vmatpush3.msra.mxu1 %v218_v31  ;;  %v88_v44 = vld [vmem:[#allocation5 + $0x20] sm:$0xff]  ;;  %v214_v47 = vld [vmem:[#allocation6 + $0x38] sm:$0xff]  ;;  %v86_v48 = vld [vmem:[#allocation5 + $0x10] sm:$0xff] }
  0x45   :  { %143 = vmatpush1.msra.mxu0 %v100_v20  ;;  %469 = vmatprep.subr.mxu1 %v233_v33  ;;  %v229_v49 = vld [vmem:[#allocation6 + $0xb0] sm:$0xff]  ;;  %v85_v50 = vld [vmem:[#allocation5 + $0x8] sm:$0xff]  ;;  %v84_v52 = vld [vmem:[#allocation5] sm:$0xff] }
  0x46   :  { %144 = vmatprep.subr.mxu0 %v99_v22  ;;  %470 = vmatpush3.msra.mxu1 %v217_v35  ;;  %v213_v51 = vld [vmem:[#allocation6 + $0x30] sm:$0xff]  ;;  %v228_v53 = vld [vmem:[#allocation6 + $0xa8] sm:$0xff]  ;;  %v651_v54 = vld [vmem:[%s672_s1] sm:$0xff]  ;;  %v118_v22 = vlaneseq  ;;  %s201_s1 = sld [smem:[#allocation2]] }
  0x47   :  { %145 = vmatpush1.msra.mxu0 %v98_v24  ;;  %471 = vmatprep.subr.mxu1 %v232_v37  ;;  %v212_v55 = vld [vmem:[#allocation6 + $0x28] sm:$0xff]  ;;  %v227_v56 = vld [vmem:[#allocation6 + $0xa0] sm:$0xff]  ;;  %v226_v58 = vld [vmem:[#allocation6 + $0x98] sm:$0xff] }
  0x48   :  { %146 = vmatprep.subr.mxu0 %v97_v26  ;;  %472 = vmatpush3.msra.mxu1 %v216_v39  ;;  %v211_v57 = vld [vmem:[#allocation6 + $0x20] sm:$0xff]  ;;  %v210_v59 = vld [vmem:[#allocation6 + $0x18] sm:$0xff]  ;;  %v225_v60 = vld [vmem:[#allocation6 + $0x90] sm:$0xff]  ;;  %v119_v23 = vshrl.u32 %v118_v22, 7 }
  0x49   :  { %147 = vmatpush1.msra.mxu0 %v96_v28  ;;  %473 = vmatprep.subr.mxu1 %v231_v41  ;;  %v209_v61 = vld [vmem:[#allocation6 + $0x10] sm:$0xff]  ;;  %v224_v62 = vld [vmem:[#allocation6 + $0x88] sm:$0xff]  ;;  %v223_v0 = vld [vmem:[#allocation6 + $0x80] sm:$0xff] }
  0x4a   :  { %148 = vmatprep.subr.mxu0 %v95_v30  ;;  %474 = vmatpush3.msra.mxu1 %v215_v43  ;;  %v208_v63 = vld [vmem:[#allocation6 + $0x8] sm:$0xff]  ;;  %v207_v1 = vld [vmem:[#allocation6] sm:$0xff]  ;;  %v353_v2 = vld [vmem:[#allocation8 + $0xf8] sm:$0xff]  ;;  %v120_v24 = vsub.s32 0, %v119_v23  ;;  %v124_v26 = vsub.s32 1, %v119_v23 }
  0x4b   :  { %149 = vmatpush1.msra.mxu0 %v94_v32  ;;  %475 = vmatprep.subr.mxu1 %v230_v45  ;;  %v352_v3 = vld [vmem:[#allocation8 + $0xf0] sm:$0xff]  ;;  %v350_v5 = vld [vmem:[#allocation8 + $0xe0] sm:$0xff]  ;;  %v349_v6 = vld [vmem:[#allocation8 + $0xd8] sm:$0xff] }
  0x4c   :  { %150 = vmatprep.subr.mxu0 %v93_v34  ;;  %476 = vmatpush3.msra.mxu1 %v214_v47  ;;  %v348_v7 = vld [vmem:[#allocation8 + $0xd0] sm:$0xff]  ;;  %v347_v8 = vld [vmem:[#allocation8 + $0xc8] sm:$0xff]  ;;  %v346_v9 = vld [vmem:[#allocation8 + $0xc0] sm:$0xff]  ;;  %v202_v31 = vstv %s201_s1 }
  0x4d   :  { %151 = vmatpush1.msra.mxu0 %v92_v36  ;;  %477 = vmatprep.subr.mxu1 %v229_v49  ;;  %v345_v10 = vld [vmem:[#allocation8 + $0xb8] sm:$0xff]  ;;  %v344_v11 = vld [vmem:[#allocation8 + $0xb0] sm:$0xff]  ;;  %v343_v12 = vld [vmem:[#allocation8 + $0xa8] sm:$0xff] }
  0x4e   :  { %152 = vmatprep.subr.mxu0 %v91_v38  ;;  %478 = vmatpush3.msra.mxu1 %v213_v51  ;;  %v342_v13 = vld [vmem:[#allocation8 + $0xa0] sm:$0xff]  ;;  %v341_v14 = vld [vmem:[#allocation8 + $0x98] sm:$0xff]  ;;  %v340_v15 = vld [vmem:[#allocation8 + $0x90] sm:$0xff] }
  0x4f   :  { %153 = vmatpush1.msra.mxu0 %v90_v40  ;;  %479 = vmatprep.subr.mxu1 %v228_v53  ;;  %v339_v16 = vld [vmem:[#allocation8 + $0x88] sm:$0xff]  ;;  %v338_v17 = vld [vmem:[#allocation8 + $0x80] sm:$0xff]  ;;  %v337_v18 = vld [vmem:[#allocation8 + $0x78] sm:$0xff] }
  0x50   :  { %154 = vmatprep.subr.mxu0 %v89_v42  ;;  %480 = vmatpush3.msra.mxu1 %v212_v55  ;;  %v336_v19 = vld [vmem:[#allocation8 + $0x70] sm:$0xff]  ;;  %v335_v20 = vld [vmem:[#allocation8 + $0x68] sm:$0xff]  ;;  %v334_v21 = vld [vmem:[#allocation8 + $0x60] sm:$0xff] }
  0x51   :  { %155 = vmatpush1.msra.mxu0 %v88_v44  ;;  %481 = vmatprep.subr.mxu1 %v227_v56  ;;  %v116_v25 = vld [vmem:[%s674_s3] sm:$0x3]  ;;  %v333_v38 = vld [vmem:[#allocation8 + $0x58] sm:$0xff]  ;;  %v332_v39 = vld [vmem:[#allocation8 + $0x50] sm:$0xff]  ;;  %s457_s3 = sld [smem:[#allocation2 + $0x1]] }
  0x52   :  { %156 = vmatprep.subr.mxu0 %v87_v46  ;;  %482 = vmatpush3.msra.mxu1 %v211_v57  ;;  %v121_v27 = vrot.slane %v116_v25, %v120_v24  ;;  %v125_v28 = vrot.slane %v116_v25, %v124_v26  ;;  %v331_v40 = vld [vmem:[#allocation8 + $0x48] sm:$0xff]  ;;  %v330_v41 = vld [vmem:[#allocation8 + $0x40] sm:$0xff]  ;;  %v329_v42 = vld [vmem:[#allocation8 + $0x38] sm:$0xff] }
  0x53   :  { %157 = vmatpush1.msra.mxu0 %v86_v48  ;;  %483 = vmatprep.subr.mxu1 %v226_v58  ;;  %v328_v43 = vld [vmem:[#allocation8 + $0x30] sm:$0xff]  ;;  %v327_v44 = vld [vmem:[#allocation8 + $0x28] sm:$0xff]  ;;  %v326_v45 = vld [vmem:[#allocation8 + $0x20] sm:$0xff] }
  0x54   :  { %158 = vmatprep.subr.mxu0 %v85_v50  ;;  %484 = vmatpush3.msra.mxu1 %v210_v59  ;;  %v325_v46 = vld [vmem:[#allocation8 + $0x18] sm:$0xff]  ;;  %v324_v47 = vld [vmem:[#allocation8 + $0x10] sm:$0xff]  ;;  %v323_v48 = vld [vmem:[#allocation8 + $0x8] sm:$0xff] }
  0x55   :  { %159 = vmatpush1.msra.mxu0 %v84_v52  ;;  %485 = vmatprep.subr.mxu1 %v225_v60  ;;  %v322_v49 = vld [vmem:[#allocation8] sm:$0xff] }
  0x56   :  { %193 = vmatmul.mubr.f32.vlgmr.msra.gmra.mxu0 %v651_v54  ;;  %486 = vmatpush3.msra.mxu1 %v209_v61  ;;  %v456_v51 = vld [vmem:[%s676_s5] ss:$0 sm:$0xff] }
  0x57   :  { %430 = vmatprep.mubr.f32.mxu0 %v589_v4  ;;  %487 = vmatprep.subr.mxu1 %v224_v62  ;;  %v351_v4 = vld [vmem:[#allocation8 + $0xe8] sm:$0xff]  ;;  %v318_v55 = vstv %s457_s3  ;;  %v354_v60 = vld [vmem:[%s678_s7] sm:$0x3] }
  0x58   :  { %488 = vmatpush3.msra.mxu1 %v208_v63  ;;  %366 = vmatprep.subr.mxu0 %v353_v2  ;;  %v359_v61 = vrot.slane %v354_v60, %v120_v24  ;;  %v363_v62 = vrot.slane %v354_v60, %v124_v26 }
  0x59   :  { %489 = vmatprep.subr.mxu1 %v223_v0  ;;  %367 = vmatpush1.msra.mxu0 %v352_v3  ;;  %v440_v0 = vstv %s458_s9 }
  0x5a   :  { %490 = vmatpush3.msra.mxu1 %v207_v1  ;;  %368 = vmatprep.subr.mxu0 %v351_v4 }
  0x5b   :  { %369 = vmatpush1.msra.mxu0 %v350_v5 }
  0x5c   :  { %370 = vmatprep.subr.mxu0 %v349_v6 }
  0x5d   :  { %371 = vmatpush1.msra.mxu0 %v348_v7 }
  0x5e   :  { %372 = vmatprep.subr.mxu0 %v347_v8 }
  0x5f   :  { %373 = vmatpush1.msra.mxu0 %v346_v9 }
  0x60   :  { %374 = vmatprep.subr.mxu0 %v345_v10 }
  0x61   :  { %375 = vmatpush1.msra.mxu0 %v344_v11 }
  0x62   :  { %376 = vmatprep.subr.mxu0 %v343_v12 }
  0x63   :  { %377 = vmatpush1.msra.mxu0 %v342_v13 }
  0x64   :  { %378 = vmatprep.subr.mxu0 %v341_v14 }
  0x65   :  { %379 = vmatpush1.msra.mxu0 %v340_v15 }
  0x66   :  { %380 = vmatprep.subr.mxu0 %v339_v16 }
  0x67   :  { %381 = vmatpush1.msra.mxu0 %v338_v17 }
  0x68   :  { %382 = vmatprep.subr.mxu0 %v337_v18 }
  0x69   :  { %383 = vmatpush1.msra.mxu0 %v336_v19 }
  0x6a   :  { %384 = vmatprep.subr.mxu0 %v335_v20 }
  0x6b   :  { %385 = vmatpush1.msra.mxu0 %v334_v21 }
  0x6c   :  { %386 = vmatprep.subr.mxu0 %v333_v38 }
  0x6d   :  { %387 = vmatpush1.msra.mxu0 %v332_v39 }
  0x6e   :  { %388 = vmatprep.subr.mxu0 %v331_v40 }
  0x6f   :  { %389 = vmatpush1.msra.mxu0 %v330_v41 }
  0x70   :  { %390 = vmatprep.subr.mxu0 %v329_v42 }
  0x71   :  { %391 = vmatpush1.msra.mxu0 %v328_v43 }
  0x72   :  { %392 = vmatprep.subr.mxu0 %v327_v44 }
  0x73   :  { %393 = vmatpush1.msra.mxu0 %v326_v45 }
  0x74   :  { %394 = vmatprep.subr.mxu0 %v325_v46 }
  0x75   :  { %395 = vmatpush1.msra.mxu0 %v324_v47 }
  0x76   :  { %396 = vmatprep.subr.mxu0 %v323_v48 }
  0x77   :  { %397 = vmatpush1.msra.mxu0 %v322_v49 }
 0x116   :  { %v194_v29 = vpop.f32.mrf.mxu0 }
 0x117   :  { %v195_v30 = vadd.f32 %v194_v29, %v121_v27 }
 0x118   :  { %v196_v32 = vpop.f32.mrf.mxu0 }
 0x119   :  { %v197_v33 = vadd.f32 %v196_v32, %v125_v28  ;;  %v203_v34 = vmul.f32 %v202_v31, %v195_v30  ;;  %vm199_vm1 = vcmp.ge.f32.partialorder %v195_v30, 0.0 }
 0x11b   :  { %vm200_vm0 = vcmp.ge.f32.partialorder %v197_v33, 0.0  ;;  %v204_v35 = vmul.f32 %v202_v31, %v197_v33  ;;  %v205_v37 = vsel %vm199_vm1, %v195_v30, %v203_v34 }
 0x11d   :  { %v206_v36 = vsel %vm200_vm0, %v197_v33, %v204_v35 }
 0x11e   :  { %310 = vmatprep.mubr.f32.mxu1 %v206_v36 }
 0x11f   :  { %311 = vmatmul.mubr.f32.vlgmr.msra.gmra.mxu1 %v205_v37 }
 0x1df   :  { %v491_v50 = vpop.f32.mrf.mxu1 }
 0x1e1   :  { %v492_v52 = vpop.f32.mrf.mxu1 }
 0x1e2   :  { %v493_v53 = vadd.f32 %v492_v52, %v491_v50 }
 0x1e4   :  { %v313_v56 = vadd.f32 %v493_v53, %v456_v51 }
 0x1e6   :  { %vm316_vm2 = vcmp.ge.f32.partialorder %v313_v56, 0.0  ;;  %v319_v57 = vmul.f32 %v318_v55, %v313_v56 }
 0x1e8   :  { %v320_v58 = vsel %vm316_vm2, %v313_v56, %v319_v57 }
 0x1e9   :  { %v321_v59 = vsub.f32 %v320_v58, %v651_v54 }
 0x1eb   :  { %431 = vmatmul.mubr.f32.vlgmr.msra.gmra.mxu0 %v321_v59 }
 0x2ab   :  { %v432_v63 = vpop.f32.mrf.mxu0 }
 0x2ac   :  { %v433_v1 = vadd.f32 %v432_v63, %v359_v61 }
 0x2ad   :  { %v434_v2 = vpop.f32.mrf.mxu0 }
 0x2ae   :  { %vm437_vm3 = vcmp.ge.f32.partialorder %v433_v1, 0.0  ;;  %v441_v3 = vmul.f32 %v440_v0, %v433_v1  ;;  %v435_v4 = vadd.f32 %v434_v2, %v363_v62 }
 0x2b0   :  { %v443_v5 = vsel %vm437_vm3, %v433_v1, %v441_v3  ;;  %vm438_vm4 = vcmp.ge.f32.partialorder %v435_v4, 0.0  ;;  %v442_v6 = vmul.f32 %v440_v0, %v435_v4 }
 0x2b1   :  { %v445_v7 = vadd.f32 %v443_v5, %v205_v37 }
 0x2b2   :  { %v444_v54 = vsel %vm438_vm4, %v435_v4, %v442_v6 }
 0x2b3   :  { %447 = vst [vmem:[%s679_s8] sm:$0xff] %v445_v7  ;;  %v446_v8 = vadd.f32 %v444_v54, %v206_v36 }
 0x2b5   :  { %448 = vst [vmem:[%s679_s8 + $0x8] sm:$0xff] %v446_v8 }
 0x2b6   :  { %453 = vsyncpa [#allocation3], 1 }
 0x2b7   :  { %454 = vsyncpa [#allocation7], 1 }
 0x2b8   :  { %455 = vsyncpa [#allocation4], 1 }

</bundles_post_ra>
